<compile_context>
chip_gen: v5e
topology: v5e:2x2
jax: 0.10.0
libtpu: 0.0.40
codegen_flags: <defaults>
</compile_context>

<pallas_src>
import functools

import jax
import jax.numpy as jnp
from jax.experimental import pallas as pl
from jax.experimental.pallas import tpu as pltpu


def _round_up(n: int, m: int) -> int:
    return ((n + m - 1) // m) * m


def encoder_fc_kernel(x_ref, w1_ref, b1_ref, w2_ref, b2_ref, w3_ref, b3_ref,
                      o_ref):
    """Fused [FC-ReLU]x3 — bf16 MXU operands, f32 accumulation."""
    x = x_ref[...]  # (TB, Ki) bf16

    h1 = jnp.dot(x, w1_ref[...], preferred_element_type=jnp.float32)
    h1 = jnp.maximum(h1 + b1_ref[...], 0.0)            # f32 bias + ReLU
    h1 = h1.astype(jnp.bfloat16)                        # bf16 MXU feed

    h2 = jnp.dot(h1, w2_ref[...], preferred_element_type=jnp.float32)
    h2 = jnp.maximum(h2 + b2_ref[...], 0.0)
    h2 = h2.astype(jnp.bfloat16)

    h3 = jnp.dot(h2, w3_ref[...], preferred_element_type=jnp.float32)
    h3 = jnp.maximum(h3 + b3_ref[...], 0.0)

    o_ref[...] = h3.astype(o_ref.dtype)                 # single cast at store


def _vmem_limit_bytes(tb, ki, kh, ko):
    """Resident weights + biases + double-buffered I/O + f32 intermediates."""
    bf16, f32 = 2, 4
    weights = (ki * kh + kh * kh + kh * ko) * bf16
    biases = (2 * kh + ko) * f32
    io = 2 * (tb * ki * bf16) + 2 * (tb * ko * f32)      # 2x double-buffered
    interm = 2 * tb * kh * f32
    need = weights + biases + io + interm
    # 2x margin, floor 8 MiB, cap 64 MiB (v7x physical VMEM).
    return int(min(max(2 * need, 8 << 20), 64 << 20))


@functools.partial(jax.jit, static_argnames=("tb",))
def encoder_fc(x, params, *, tb=256):
    """params = (w1, b1, w2, b2, w3, b3); wK: (in, out) f32, bK: (1, out) f32."""
    w1, b1, w2, b2, w3, b3 = params
    B, feat_i = x.shape
    feat_h = w1.shape[1]
    feat_o = w3.shape[1]

    # Lane-dense padded feature dims (multiples of 128; 256 is even better on
    # v6e for big layers, but 128 keeps waste low at small feature counts).
    Ki = _round_up(feat_i, 128)
    Kh = _round_up(feat_h, 128)
    Ko = _round_up(feat_o, 128)

    # Batch tile: multiple of 8 sublanes, at most `tb` rows per grid step.
    TB = min(tb, _round_up(B, 8))
    B_pad = _round_up(B, TB)

    # Zero-pad operands (zeros in padded weight rows/cols and biases keep the
    # math identical); cast MXU operands to bf16, keep biases in f32.
    xp = jnp.pad(x, ((0, B_pad - B), (0, Ki - feat_i))).astype(jnp.bfloat16)
    w1p = jnp.pad(w1, ((0, Ki - feat_i), (0, Kh - feat_h))).astype(jnp.bfloat16)
    w2p = jnp.pad(w2, ((0, Kh - feat_h), (0, Kh - feat_h))).astype(jnp.bfloat16)
    w3p = jnp.pad(w3, ((0, Kh - feat_h), (0, Ko - feat_o))).astype(jnp.bfloat16)
    b1p = jnp.pad(b1, ((0, 0), (0, Kh - feat_h))).astype(jnp.float32)
    b2p = jnp.pad(b2, ((0, 0), (0, Kh - feat_h))).astype(jnp.float32)
    b3p = jnp.pad(b3, ((0, 0), (0, Ko - feat_o))).astype(jnp.float32)

    grid = (B_pad // TB,)

    # x / out: tiled over batch (pipelined).  Weights/biases: constant block
    # index -> DMA'd once, resident in VMEM for every grid step.
    in_specs = [
        pl.BlockSpec((TB, Ki), lambda i: (i, 0)),
        pl.BlockSpec((Ki, Kh), lambda i: (0, 0)),
        pl.BlockSpec((1, Kh), lambda i: (0, 0)),
        pl.BlockSpec((Kh, Kh), lambda i: (0, 0)),
        pl.BlockSpec((1, Kh), lambda i: (0, 0)),
        pl.BlockSpec((Kh, Ko), lambda i: (0, 0)),
        pl.BlockSpec((1, Ko), lambda i: (0, 0)),
    ]
    out_specs = pl.BlockSpec((TB, Ko), lambda i: (i, 0))

    # TODO(synk): for very large feat_h where w2 (Kh x Kh) alone exceeds the
    # per-generation VMEM budget, add a K-reduction grid axis with a VMEM f32
    # accumulator + pl.when init/finalize instead of keeping w2 resident.

    out_pad = pl.pallas_call(
        encoder_fc_kernel,
        out_shape=jax.ShapeDtypeStruct((B_pad, Ko), x.dtype),
        grid=grid,
        in_specs=in_specs,
        out_specs=out_specs,
        compiler_params=pltpu.CompilerParams(
            dimension_semantics=("parallel",),          # megacore on v7x
            vmem_limit_bytes=_vmem_limit_bytes(TB, Ki, Kh, Ko),
        ),
    )(xp, w1p, b1p, w2p, b2p, w3p, b3p)

    return out_pad[:B, :feat_o]


def init_params(key, feat_i, feat_h, feat_o, dtype=jnp.float32):
    """Deterministic init mimicking nn.Linear's uniform(-1/sqrt(fan_in), ...)."""
    ks = jax.random.split(key, 6)

    def linear(kw, kb, fan_in, fan_out):
        bound = 1.0 / jnp.sqrt(fan_in)
        w = jax.random.uniform(kw, (fan_in, fan_out), dtype, -bound, bound)
        b = jax.random.uniform(kb, (1, fan_out), dtype, -bound, bound)
        return w, b

    w1, b1 = linear(ks[0], ks[1], feat_i, feat_h)
    w2, b2 = linear(ks[2], ks[3], feat_h, feat_h)
    w3, b3 = linear(ks[4], ks[5], feat_h, feat_o)
    return (w1, b1, w2, b2, w3, b3)


def encoder_fc_ref(x, params, compute_dtype=jnp.float32):
    """Plain-JAX reference (optionally bf16-matmul to mirror the kernel)."""
    w1, b1, w2, b2, w3, b3 = params

    def layer(h, w, b):
        y = jnp.dot(h.astype(compute_dtype), w.astype(compute_dtype),
                    preferred_element_type=jnp.float32)
        return jnp.maximum(y + b.astype(jnp.float32), 0.0)

    h = layer(x, w1, b1)
    h = layer(h, w2, b2)
    return layer(h, w3, b3)


if __name__ == "__main__":
    # Small config consistent with ConfEncoderFC(feat_i, feat_h, feat_o).
    B, feat_i, feat_h, feat_o = 2, 16, 32, 8

    key = jax.random.PRNGKey(0)
    k_x, k_p = jax.random.split(key)
    x = jax.random.normal(k_x, (B, feat_i), dtype=jnp.float32)
    params = init_params(k_p, feat_i, feat_h, feat_o)

    out = jax.block_until_ready(encoder_fc(x, params))
    assert out.shape == (B, feat_o)

    # Tight check against a bf16-matmul reference (same rounding as kernel).
    ref_bf16 = encoder_fc_ref(x, params, compute_dtype=jnp.bfloat16)
    assert jnp.allclose(out, ref_bf16, atol=1e-4, rtol=1e-4)

    # Semantic check against the full-f32 PyTorch-equivalent reference
    # (looser tolerance: bf16 MXU inputs, f32 accumulation).
    ref_f32 = encoder_fc_ref(x, params, compute_dtype=jnp.float32)
    assert jnp.allclose(out, ref_f32, atol=5e-2, rtol=5e-2)

    print("KERNEL_OK")
</pallas_src>

<mosaic_0001>
module attributes {stable_mosaic.version = 11 : i64} {
  func.func @encoder_fc_kernel(%arg0: i32, %arg1: memref<8x128xbf16, #tpu.memory_space<vmem>>, %arg2: memref<128x128xbf16, #tpu.memory_space<vmem>>, %arg3: memref<1x128xf32, #tpu.memory_space<vmem>>, %arg4: memref<128x128xbf16, #tpu.memory_space<vmem>>, %arg5: memref<1x128xf32, #tpu.memory_space<vmem>>, %arg6: memref<128x128xbf16, #tpu.memory_space<vmem>>, %arg7: memref<1x128xf32, #tpu.memory_space<vmem>>, %arg8: memref<8x128xf32, #tpu.memory_space<vmem>>) attributes {dimension_semantics = [#tpu.dimension_semantics<parallel>], iteration_bounds = array<i64: 1>, scalar_prefetch = 0 : i64, scratch_operands = 0 : i64, tpu.core_type = #tpu.core_type<tc>, window_params = [{transform_indices = @transform_0, window_bounds = array<i64: 8, 128>}, {pipeline_mode = #tpu.pipeline_mode<synchronous>, transform_indices = @transform_1, window_bounds = array<i64: 128, 128>}, {pipeline_mode = #tpu.pipeline_mode<synchronous>, transform_indices = @transform_2, window_bounds = array<i64: 1, 128>}, {pipeline_mode = #tpu.pipeline_mode<synchronous>, transform_indices = @transform_3, window_bounds = array<i64: 128, 128>}, {pipeline_mode = #tpu.pipeline_mode<synchronous>, transform_indices = @transform_4, window_bounds = array<i64: 1, 128>}, {pipeline_mode = #tpu.pipeline_mode<synchronous>, transform_indices = @transform_5, window_bounds = array<i64: 128, 128>}, {pipeline_mode = #tpu.pipeline_mode<synchronous>, transform_indices = @transform_6, window_bounds = array<i64: 1, 128>}, {transform_indices = @transform_7, window_bounds = array<i64: 8, 128>}]} {
    %c0 = arith.constant 0 : index
    %c0_0 = arith.constant 0 : index
    %0 = vector.load %arg1[%c0, %c0_0] : memref<8x128xbf16, #tpu.memory_space<vmem>>, vector<8x128xbf16>
    %c0_1 = arith.constant 0 : index
    %c0_2 = arith.constant 0 : index
    %1 = vector.load %arg2[%c0_1, %c0_2] : memref<128x128xbf16, #tpu.memory_space<vmem>>, vector<128x128xbf16>
    %cst = arith.constant dense<0.000000e+00> : vector<8x128xf32>
    %2 = tpu.matmul %0, %1, %cst {dimension_numbers = #tpu.dot_dimension_numbers<[1], [0], [0], [1], [0, 0, 1, 1], [], []>} : vector<8x128xbf16>, vector<128x128xbf16>, vector<8x128xf32> -> vector<8x128xf32>
    %c0_3 = arith.constant 0 : index
    %c0_4 = arith.constant 0 : index
    %3 = vector.load %arg3[%c0_3, %c0_4] : memref<1x128xf32, #tpu.memory_space<vmem>>, vector<1x128xf32>
    %4 = vector.broadcast %3 : vector<1x128xf32> to vector<8x128xf32>
    %5 = arith.addf %2, %4 : vector<8x128xf32>
    %cst_5 = arith.constant 0.000000e+00 : f32
    %6 = vector.broadcast %cst_5 : f32 to vector<8x128xf32>
    %7 = arith.maximumf %5, %6 : vector<8x128xf32>
    %8 = arith.truncf %7 : vector<8x128xf32> to vector<8x128xbf16>
    %c0_6 = arith.constant 0 : index
    %c0_7 = arith.constant 0 : index
    %9 = vector.load %arg4[%c0_6, %c0_7] : memref<128x128xbf16, #tpu.memory_space<vmem>>, vector<128x128xbf16>
    %cst_8 = arith.constant dense<0.000000e+00> : vector<8x128xf32>
    %10 = tpu.matmul %8, %9, %cst_8 {dimension_numbers = #tpu.dot_dimension_numbers<[1], [0], [0], [1], [0, 0, 1, 1], [], []>} : vector<8x128xbf16>, vector<128x128xbf16>, vector<8x128xf32> -> vector<8x128xf32>
    %c0_9 = arith.constant 0 : index
    %c0_10 = arith.constant 0 : index
    %11 = vector.load %arg5[%c0_9, %c0_10] : memref<1x128xf32, #tpu.memory_space<vmem>>, vector<1x128xf32>
    %12 = vector.broadcast %11 : vector<1x128xf32> to vector<8x128xf32>
    %13 = arith.addf %10, %12 : vector<8x128xf32>
    %cst_11 = arith.constant 0.000000e+00 : f32
    %14 = vector.broadcast %cst_11 : f32 to vector<8x128xf32>
    %15 = arith.maximumf %13, %14 : vector<8x128xf32>
    %16 = arith.truncf %15 : vector<8x128xf32> to vector<8x128xbf16>
    %c0_12 = arith.constant 0 : index
    %c0_13 = arith.constant 0 : index
    %17 = vector.load %arg6[%c0_12, %c0_13] : memref<128x128xbf16, #tpu.memory_space<vmem>>, vector<128x128xbf16>
    %cst_14 = arith.constant dense<0.000000e+00> : vector<8x128xf32>
    %18 = tpu.matmul %16, %17, %cst_14 {dimension_numbers = #tpu.dot_dimension_numbers<[1], [0], [0], [1], [0, 0, 1, 1], [], []>} : vector<8x128xbf16>, vector<128x128xbf16>, vector<8x128xf32> -> vector<8x128xf32>
    %c0_15 = arith.constant 0 : index
    %c0_16 = arith.constant 0 : index
    %19 = vector.load %arg7[%c0_15, %c0_16] : memref<1x128xf32, #tpu.memory_space<vmem>>, vector<1x128xf32>
    %20 = vector.broadcast %19 : vector<1x128xf32> to vector<8x128xf32>
    %21 = arith.addf %18, %20 : vector<8x128xf32>
    %cst_17 = arith.constant 0.000000e+00 : f32
    %22 = vector.broadcast %cst_17 : f32 to vector<8x128xf32>
    %23 = arith.maximumf %21, %22 : vector<8x128xf32>
    %c0_18 = arith.constant 0 : index
    %c0_19 = arith.constant 0 : index
    %24 = vector.load %arg8[%c0_18, %c0_19] : memref<8x128xf32, #tpu.memory_space<vmem>>, vector<8x128xf32>
    tpu.vector_store %arg8[%c0_18, %c0_19], %23 {strides = array<i32>} : memref<8x128xf32, #tpu.memory_space<vmem>>, vector<8x128xf32>,
    return
  }
  func.func @transform_0(%arg0: i32) -> (i32, i32) {
    %c0_i32 = arith.constant 0 : i32
    %c0_i32_0 = arith.constant 0 : i32
    return %arg0, %c0_i32 : i32, i32
  }
  func.func @transform_1(%arg0: i32) -> (i32, i32) {
    %c0_i32 = arith.constant 0 : i32
    %c0_i32_0 = arith.constant 0 : i32
    %c0_i32_1 = arith.constant 0 : i32
    return %c0_i32, %c0_i32_0 : i32, i32
  }
  func.func @transform_2(%arg0: i32) -> (i32, i32) {
    %c0_i32 = arith.constant 0 : i32
    %c0_i32_0 = arith.constant 0 : i32
    %c0_i32_1 = arith.constant 0 : i32
    return %c0_i32, %c0_i32_0 : i32, i32
  }
  func.func @transform_3(%arg0: i32) -> (i32, i32) {
    %c0_i32 = arith.constant 0 : i32
    %c0_i32_0 = arith.constant 0 : i32
    %c0_i32_1 = arith.constant 0 : i32
    return %c0_i32, %c0_i32_0 : i32, i32
  }
  func.func @transform_4(%arg0: i32) -> (i32, i32) {
    %c0_i32 = arith.constant 0 : i32
    %c0_i32_0 = arith.constant 0 : i32
    %c0_i32_1 = arith.constant 0 : i32
    return %c0_i32, %c0_i32_0 : i32, i32
  }
  func.func @transform_5(%arg0: i32) -> (i32, i32) {
    %c0_i32 = arith.constant 0 : i32
    %c0_i32_0 = arith.constant 0 : i32
    %c0_i32_1 = arith.constant 0 : i32
    return %c0_i32, %c0_i32_0 : i32, i32
  }
  func.func @transform_6(%arg0: i32) -> (i32, i32) {
    %c0_i32 = arith.constant 0 : i32
    %c0_i32_0 = arith.constant 0 : i32
    %c0_i32_1 = arith.constant 0 : i32
    return %c0_i32, %c0_i32_0 : i32, i32
  }
  func.func @transform_7(%arg0: i32) -> (i32, i32) {
    %c0_i32 = arith.constant 0 : i32
    %c0_i32_0 = arith.constant 0 : i32
    return %arg0, %c0_i32 : i32, i32
  }
}

</mosaic_0001>

<bundles_post_ra>
// kernel: encoder_fc.1
= control target key start
LH: loop header
LB: loop body
LE: loop exit
PB: predicated region body
PF: predicated region fallthrough
CT: control target
= control target key end

     0   :  { %s530_s1 = inlined_call_operand.vmem [shape: bf16[128,128], index: 1, kind: input, shape index: {}]   ;;  %s531_s3 = inlined_call_operand.vmem [shape: bf16[128,128], index: 3, kind: input, shape index: {}]   ;;  %s532_s2 = inlined_call_operand.vmem [shape: f32[1,128], index: 2, kind: input, shape index: {}]   ;;  %s533_s0 = inlined_call_operand.vmem [shape: bf16[8,128], index: 0, kind: input, shape index: {}]   ;;  %s534_s4 = inlined_call_operand.vmem [shape: f32[1,128], index: 4, kind: input, shape index: {}]   ;;  %s535_s5 = inlined_call_operand.vmem [shape: bf16[128,128], index: 5, kind: input, shape index: {}]   ;;  %s536_s6 = inlined_call_operand.vmem [shape: f32[1,128], index: 6, kind: input, shape index: {}]   ;;  %s537_s7 = inlined_call_operand.vmem [shape: f32[8,128], index: 7, kind: output, shape index: {}]  }
   0x1   :  { %v383_v0 = vld [vmem:[%s530_s1 + $0x38] sm:$0xff]  ;;  %v382_v1 = vld [vmem:[%s530_s1 + $0x30] sm:$0xff]  ;;  %v381_v4 = vld [vmem:[%s530_s1 + $0x28] sm:$0xff] }
   0x2   :  { %95 = vmatpush.bf16.msra.mxu0 %v383_v0  ;;  %v391_v2 = vld [vmem:[%s531_s3 + $0x38] sm:$0xff]  ;;  %v390_v3 = vld [vmem:[%s531_s3 + $0x30] sm:$0xff]  ;;  %v389_v5 = vld [vmem:[%s531_s3 + $0x28] sm:$0xff] }
   0x3   :  { %178 = vmatpush.bf16.msra.mxu1 %v391_v2  ;;  %v380_v6 = vld [vmem:[%s530_s1 + $0x20] sm:$0xff]  ;;  %v379_v8 = vld [vmem:[%s530_s1 + $0x18] sm:$0xff]  ;;  %v378_v10 = vld [vmem:[%s530_s1 + $0x10] sm:$0xff] }
   0x4   :  { %v388_v7 = vld [vmem:[%s531_s3 + $0x20] sm:$0xff]  ;;  %v387_v9 = vld [vmem:[%s531_s3 + $0x18] sm:$0xff]  ;;  %v386_v11 = vld [vmem:[%s531_s3 + $0x10] sm:$0xff] }
   0x5   :  { %v377_v12 = vld [vmem:[%s530_s1 + $0x8] sm:$0xff]  ;;  %v376_v13 = vld [vmem:[%s530_s1] sm:$0xff]  ;;  %v399_v17 = vld [vmem:[%s535_s5 + $0x38] sm:$0xff] }
   0x6   :  { %96 = vmatpush.bf16.msra.mxu0 %v382_v1  ;;  %v26_v14 = vld [vmem:[%s533_s0] sm:$0xf]  ;;  %v385_v15 = vld [vmem:[%s531_s3 + $0x8] sm:$0xff]  ;;  %261 = vmatpush.bf16.msra.mxu2 %v399_v17  ;;  %v398_v18 = vld [vmem:[%s535_s5 + $0x30] sm:$0xff] }
   0x7   :  { %179 = vmatpush.bf16.msra.mxu1 %v390_v3  ;;  %v384_v16 = vld [vmem:[%s531_s3] sm:$0xff]  ;;  %v397_v19 = vld [vmem:[%s535_s5 + $0x28] sm:$0xff]  ;;  %v395_v21 = vld [vmem:[%s535_s5 + $0x18] sm:$0xff] }
   0x8   :  { %v396_v20 = vld [vmem:[%s535_s5 + $0x20] sm:$0xff]  ;;  %v394_v22 = vld [vmem:[%s535_s5 + $0x10] sm:$0xff]  ;;  %v393_v29 = vld [vmem:[%s535_s5 + $0x8] sm:$0xff] }
   0x9   :  { %v400_v23 = vld [vmem:[%s532_s2] ss:$0 sm:$0xff] }
   0xa   :  { %97 = vmatpush.bf16.msra.mxu0 %v381_v4  ;;  %262 = vmatpush.bf16.msra.mxu2 %v398_v18  ;;  %v392_v30 = vld [vmem:[%s535_s5] sm:$0xff] }
   0xb   :  { %180 = vmatpush.bf16.msra.mxu1 %v389_v5  ;;  %v401_v31 = vld [vmem:[%s534_s4] ss:$0 sm:$0xff] }
   0xc   :  { %v402_v37 = vld [vmem:[%s536_s6] ss:$0 sm:$0xff] }
   0xe   :  { %98 = vmatpush.bf16.msra.mxu0 %v380_v6  ;;  %263 = vmatpush.bf16.msra.mxu2 %v397_v19 }
   0xf   :  { %181 = vmatpush.bf16.msra.mxu1 %v388_v7 }
  0x12   :  { %99 = vmatpush.bf16.msra.mxu0 %v379_v8  ;;  %264 = vmatpush.bf16.msra.mxu2 %v396_v20 }
  0x13   :  { %182 = vmatpush.bf16.msra.mxu1 %v387_v9 }
  0x16   :  { %100 = vmatpush.bf16.msra.mxu0 %v378_v10  ;;  %265 = vmatpush.bf16.msra.mxu2 %v395_v21 }
  0x17   :  { %183 = vmatpush.bf16.msra.mxu1 %v386_v11 }
  0x1a   :  { %101 = vmatpush.bf16.msra.mxu0 %v377_v12  ;;  %266 = vmatpush.bf16.msra.mxu2 %v394_v22 }
  0x1b   :  { %184 = vmatpush.bf16.msra.mxu1 %v385_v15 }
  0x1e   :  { %102 = vmatpush.bf16.msra.mxu0 %v376_v13  ;;  %267 = vmatpush.bf16.msra.mxu2 %v393_v29 }
  0x1f   :  { %185 = vmatpush.bf16.msra.mxu1 %v384_v16 }
  0x21   :  { %103 = vmatmul.bf16.vlgmr.msra.gmra.mxu0 %v26_v14 }
  0x22   :  { %268 = vmatpush.bf16.msra.mxu2 %v392_v30 }
  0x9e   :  { %v104_v24 = vpop.f32.mrf.mxu0 }
  0x9f   :  { %v105_v25 = vadd.f32 %v400_v23, %v104_v24 }
  0xa1   :  { %v108_v26 = vmax.f32 %v105_v25, 0.0 }
  0xa3   :  { %v109_v27 = vpack.c.bf16 %v108_v26, %v108_v26 }
  0xa5   :  { %186 = vmatmul.bf16.vlgmr.msra.gmra.mxu1 %v109_v27 }
  0xa6   :  { %v106_v28 = vpop.f32.mrf.mxu0 }
 0x122   :  { %v187_v32 = vpop.f32.mrf.mxu1 }
 0x123   :  { %v188_v33 = vadd.f32 %v401_v31, %v187_v32 }
 0x125   :  { %v191_v34 = vmax.f32 %v188_v33, 0.0 }
 0x127   :  { %v192_v35 = vpack.c.bf16 %v191_v34, %v191_v34 }
 0x129   :  { %269 = vmatmul.bf16.vlgmr.msra.gmra.mxu2 %v192_v35 }
 0x12a   :  { %v189_v36 = vpop.f32.mrf.mxu1 }
 0x1ac   :  { %v270_v38 = vpop.f32.mrf.mxu2 }
 0x1ad   :  { %v271_v39 = vadd.f32 %v402_v37, %v270_v38 }
 0x1af   :  { %v274_v40 = vmax.f32 %v271_v39, 0.0 }
 0x1b1   :  { %275 = vst [vmem:[%s537_s7] sm:$0xff] %v274_v40 }
 0x1b4   :  { %v272_v41 = vpop.f32.mrf.mxu2 }

</bundles_post_ra>
